<compile_context>
chip_gen: v6e
topology: v6e:2x2x1
jax: 0.10.0
libtpu: 0.0.40
codegen_flags: <defaults>
</compile_context>

<pallas_src>
import jax
import jax.numpy as jnp
from jax.experimental import pallas as pl
from jax.experimental.pallas import tpu as pltpu


def _self_attention_kernel(x_ref, w_ref, out_ref):
    """One grid step: attention for B_TILE independent sequences.

    x_ref:   (B_TILE, S, D_in)   f32
    w_ref:   (D_in, 3*P)         f32, Q columns pre-scaled by 1/sqrt(P)
    out_ref: (S, B_TILE*P)       f32, lane-dense (batch-major, feature-minor)
    """
    bt, s, d = x_ref.shape
    p = w_ref.shape[1] // 3

    x = x_ref[...]
    w = w_ref[...]

    # Fused Q/K/V projection: one MXU contraction over D_in for the whole tile.
    # (Leading-dim-only reshapes keep the minor dim, so they are layout-free.)
    qkv = jnp.dot(x.reshape(bt * s, d), w,
                  preferred_element_type=jnp.float32).reshape(bt, s, 3 * p)

    # NOTE: lane offsets 0 / P / 2P are not 128-aligned; fine at P=16, revisit
    # for the tiled kernel once P >= 128 (see TODO above).
    q = qkv[..., :p]              # already carries the 1/sqrt(P) scale
    k = qkv[..., p:2 * p]
    v = qkv[..., 2 * p:]

    # omega = Q_scaled . K^T, batched over the tile; contract the feature axis
    # directly (no materialized transpose on the MXU feed path).
    scores = jnp.einsum('bqd,bkd->bqk', q, k,
                        preferred_element_type=jnp.float32)        # (bt, S, S)

    # Numerically stable f32 softmax.
    m = jnp.max(scores, axis=-1, keepdims=True)
    e = jnp.exp(scores - m)
    attn = e / jnp.sum(e, axis=-1, keepdims=True)

    z = jnp.einsum('bqk,bkd->bqd', attn, v,
                   preferred_element_type=jnp.float32)             # (bt, S, P)

    # Pack batch into lanes: (S, B_TILE*P) -> one dense (unmasked) store.
    out_ref[...] = jnp.concatenate([z[b] for b in range(bt)], axis=-1)


def prepare_qkv_weights(w_q, w_k, w_v):
    """One-time prep (per parameter update, NOT per forward): fuse the three
    nn.Linear weights (each (P, D_in); y = x @ W.T) into one (D_in, 3P) matrix
    and fold the 1/sqrt(P) attention scale into the Q columns."""
    proj_dim = w_q.shape[0]
    scale = 1.0 / (proj_dim ** 0.5)
    return jnp.concatenate([w_q.T * scale, w_k.T, w_v.T],
                           axis=1).astype(jnp.float32)


def self_attention_v2(inputs, w_qkv, proj_dim):
    """MySelfAttention_V2.forward.

    inputs: (S, D_in) or (B, S, D_in) float32
    w_qkv:  (D_in, 3*proj_dim) from prepare_qkv_weights()
    Returns (S, proj_dim) or (B, S, proj_dim) float32.
    """
    squeeze_batch = inputs.ndim == 2
    x = inputs[None] if squeeze_batch else inputs
    x = x.astype(jnp.float32)
    b, s, d = x.shape
    p = proj_dim
    assert w_qkv.shape == (d, 3 * p)

    # Sequences packed per grid step so the output slab is >= 128 lanes wide.
    if 128 % p == 0:
        b_tile = 128 // p
    else:
        assert p % 128 == 0, "proj_dim must divide or be a multiple of 128"
        b_tile = 1
    lanes = b_tile * p

    num_tiles = pl.cdiv(b, b_tile)
    b_pad = num_tiles * b_tile
    if b_pad != b:
        # Zero padding is safe: zero scores -> uniform softmax -> zero output.
        x = jnp.concatenate([x, jnp.zeros((b_pad - b, s, d), jnp.float32)],
                            axis=0)

    flops = 2 * b_pad * s * (d * 3 * p + 2 * s * p)
    bytes_accessed = 4 * (b_pad * s * d + d * 3 * p + b_pad * s * p)
    cost = pl.CostEstimate(flops=flops, transcendentals=b_pad * s * s,
                           bytes_accessed=bytes_accessed)

    out = pl.pallas_call(
        _self_attention_kernel,
        out_shape=jax.ShapeDtypeStruct((s, b_pad * p), jnp.float32),
        grid=(num_tiles,),
        in_specs=[
            pl.BlockSpec((b_tile, s, d), lambda i: (i, 0, 0)),
            pl.BlockSpec((d, 3 * p), lambda i: (0, 0)),
        ],
        out_specs=pl.BlockSpec((s, lanes), lambda i: (0, i)),
        compiler_params=pltpu.CompilerParams(
            dimension_semantics=("parallel",)),   # v7x: 2 TCs split the batch
        cost_estimate=cost,
    )(x, w_qkv)

    # Cheap layout plumbing back to (B, S, P) outside the kernel.
    z = out.reshape(s, b_pad, p).transpose(1, 0, 2)[:b]
    return z[0] if squeeze_batch else z


def _reference(inputs, w_q, w_k, w_v):
    hp = jax.lax.Precision.HIGHEST
    q = jnp.einsum('...sd,pd->...sp', inputs, w_q, precision=hp)
    k = jnp.einsum('...sd,pd->...sp', inputs, w_k, precision=hp)
    v = jnp.einsum('...sd,pd->...sp', inputs, w_v, precision=hp)
    omega = jnp.einsum('...qd,...kd->...qk', q, k, precision=hp)
    attn = jax.nn.softmax(omega / (w_q.shape[0] ** 0.5), axis=-1)
    return jnp.einsum('...qk,...kd->...qd', attn, v, precision=hp)


if __name__ == "__main__":
    # Shapes consistent with the module's forward: seq=8, inp_dim=32, proj_dim=16,
    # applied over a small batch of 16 independent sequences.
    batch, seq, inp_dim, proj_dim = 16, 8, 32, 16
    key = jax.random.PRNGKey(0)
    k_x, k_q, k_k, k_v = jax.random.split(key, 4)

    x = jax.random.normal(k_x, (batch, seq, inp_dim), dtype=jnp.float32)
    # Deterministic init mimicking nn.Linear default (uniform +/- 1/sqrt(in_features)).
    bound = 1.0 / (inp_dim ** 0.5)
    w_q = jax.random.uniform(k_q, (proj_dim, inp_dim), minval=-bound,
                             maxval=bound, dtype=jnp.float32)
    w_k = jax.random.uniform(k_k, (proj_dim, inp_dim), minval=-bound,
                             maxval=bound, dtype=jnp.float32)
    w_v = jax.random.uniform(k_v, (proj_dim, inp_dim), minval=-bound,
                             maxval=bound, dtype=jnp.float32)

    # One-time weight fusion + scale folding (hoisted out of the forward path).
    w_qkv = prepare_qkv_weights(w_q, w_k, w_v)

    # Batched forward (grid over batch tiles, lane-dense output).
    z = self_attention_v2(x, w_qkv, proj_dim)
    jax.block_until_ready(z)
    z_ref = _reference(x, w_q, w_k, w_v)
    assert z.shape == (batch, seq, proj_dim)
    assert jnp.allclose(z, z_ref, atol=1e-5, rtol=1e-5), \
        "batched path mismatch vs reference"

    # Module-exact single-sequence call (padded internally to one batch tile).
    z1 = self_attention_v2(x[0], w_qkv, proj_dim)
    jax.block_until_ready(z1)
    assert z1.shape == (seq, proj_dim)
    assert jnp.allclose(z1, _reference(x[0], w_q, w_k, w_v),
                        atol=1e-5, rtol=1e-5), \
        "single-sequence path mismatch vs reference"

    print("KERNEL_OK")
</pallas_src>

<mosaic_0001>
module attributes {stable_mosaic.version = 11 : i64} {
  func.func @_self_attention_kernel(%arg0: i32, %arg1: memref<8x8x32xf32, #tpu.memory_space<vmem>>, %arg2: memref<32x48xf32, #tpu.memory_space<vmem>>, %arg3: memref<8x128xf32, #tpu.memory_space<vmem>>) attributes {dimension_semantics = [#tpu.dimension_semantics<parallel>], iteration_bounds = array<i64: 2>, scalar_prefetch = 0 : i64, scratch_operands = 0 : i64, tpu.core_type = #tpu.core_type<tc>, window_params = [{transform_indices = @transform_0, window_bounds = array<i64: 8, 8, 32>}, {pipeline_mode = #tpu.pipeline_mode<synchronous>, transform_indices = @transform_1, window_bounds = array<i64: 32, 48>}, {transform_indices = @transform_2, window_bounds = array<i64: 8, 128>}]} {
    %c0 = arith.constant 0 : index
    %c0_0 = arith.constant 0 : index
    %c0_1 = arith.constant 0 : index
    %0 = vector.load %arg1[%c0, %c0_0, %c0_1] : memref<8x8x32xf32, #tpu.memory_space<vmem>>, vector<8x8x32xf32>
    %c0_2 = arith.constant 0 : index
    %c0_3 = arith.constant 0 : index
    %1 = vector.load %arg2[%c0_2, %c0_3] : memref<32x48xf32, #tpu.memory_space<vmem>>, vector<32x48xf32>
    %2 = vector.shape_cast %0 : vector<8x8x32xf32> to vector<64x32xf32>
    %cst = arith.constant dense<0.000000e+00> : vector<64x48xf32>
    %3 = tpu.matmul %2, %1, %cst {dimension_numbers = #tpu.dot_dimension_numbers<[1], [0], [0], [1], [0, 0, 1, 1], [], []>} : vector<64x32xf32>, vector<32x48xf32>, vector<64x48xf32> -> vector<64x48xf32>
    %4 = vector.shape_cast %3 : vector<64x48xf32> to vector<8x8x48xf32>
    %5 = vector.extract_strided_slice %4 {offsets = [0, 0, 0], sizes = [8, 8, 16], strides = [1, 1, 1]} : vector<8x8x48xf32> to vector<8x8x16xf32>
    %6 = vector.extract_strided_slice %4 {offsets = [0, 0, 16], sizes = [8, 8, 16], strides = [1, 1, 1]} : vector<8x8x48xf32> to vector<8x8x16xf32>
    %7 = vector.extract_strided_slice %4 {offsets = [0, 0, 32], sizes = [8, 8, 16], strides = [1, 1, 1]} : vector<8x8x48xf32> to vector<8x8x16xf32>
    "tpu.trace_start"() <{level = 10 : i32, message = "bqd,bkd->bqk"}> : () -> ()
    %cst_4 = arith.constant dense<0.000000e+00> : vector<8x8x8xf32>
    %8 = tpu.matmul %5, %6, %cst_4 {dimension_numbers = #tpu.dot_dimension_numbers<[2], [2], [1], [1], [0, 0, 0, 1, 1, 1], [0], [0]>} : vector<8x8x16xf32>, vector<8x8x16xf32>, vector<8x8x8xf32> -> vector<8x8x8xf32>
    "tpu.trace_stop"() : () -> ()
    %cst_5 = arith.constant dense<0xFF800000> : vector<8x8xf32>
    %9 = vector.multi_reduction <maximumf>, %8, %cst_5 [2] : vector<8x8x8xf32> to vector<8x8xf32>
    %10 = vector.shape_cast %9 : vector<8x8xf32> to vector<8x8x1xf32>
    %11 = vector.broadcast %10 : vector<8x8x1xf32> to vector<8x8x8xf32>
    %12 = arith.subf %8, %11 : vector<8x8x8xf32>
    %13 = math.exp %12 : vector<8x8x8xf32>
    %cst_6 = arith.constant dense<0.000000e+00> : vector<8x8xf32>
    %14 = vector.multi_reduction <add>, %13, %cst_6 [2] : vector<8x8x8xf32> to vector<8x8xf32>
    %15 = vector.shape_cast %14 : vector<8x8xf32> to vector<8x8x1xf32>
    %16 = vector.broadcast %15 : vector<8x8x1xf32> to vector<8x8x8xf32>
    %17 = arith.divf %13, %16 : vector<8x8x8xf32>
    "tpu.trace_start"() <{level = 10 : i32, message = "bqk,bkd->bqd"}> : () -> ()
    %cst_7 = arith.constant dense<0.000000e+00> : vector<8x8x16xf32>
    %18 = tpu.matmul %17, %7, %cst_7 {dimension_numbers = #tpu.dot_dimension_numbers<[2], [1], [1], [2], [0, 0, 0, 1, 1, 2], [0], [0]>} : vector<8x8x8xf32>, vector<8x8x16xf32>, vector<8x8x16xf32> -> vector<8x8x16xf32>
    "tpu.trace_stop"() : () -> ()
    %19 = vector.extract_strided_slice %18 {offsets = [0, 0, 0], sizes = [1, 8, 16], strides = [1, 1, 1]} : vector<8x8x16xf32> to vector<1x8x16xf32>
    %20 = vector.shape_cast %19 : vector<1x8x16xf32> to vector<8x16xf32>
    %21 = vector.extract_strided_slice %18 {offsets = [1, 0, 0], sizes = [1, 8, 16], strides = [1, 1, 1]} : vector<8x8x16xf32> to vector<1x8x16xf32>
    %22 = vector.shape_cast %21 : vector<1x8x16xf32> to vector<8x16xf32>
    %23 = vector.extract_strided_slice %18 {offsets = [2, 0, 0], sizes = [1, 8, 16], strides = [1, 1, 1]} : vector<8x8x16xf32> to vector<1x8x16xf32>
    %24 = vector.shape_cast %23 : vector<1x8x16xf32> to vector<8x16xf32>
    %25 = vector.extract_strided_slice %18 {offsets = [3, 0, 0], sizes = [1, 8, 16], strides = [1, 1, 1]} : vector<8x8x16xf32> to vector<1x8x16xf32>
    %26 = vector.shape_cast %25 : vector<1x8x16xf32> to vector<8x16xf32>
    %27 = vector.extract_strided_slice %18 {offsets = [4, 0, 0], sizes = [1, 8, 16], strides = [1, 1, 1]} : vector<8x8x16xf32> to vector<1x8x16xf32>
    %28 = vector.shape_cast %27 : vector<1x8x16xf32> to vector<8x16xf32>
    %29 = vector.extract_strided_slice %18 {offsets = [5, 0, 0], sizes = [1, 8, 16], strides = [1, 1, 1]} : vector<8x8x16xf32> to vector<1x8x16xf32>
    %30 = vector.shape_cast %29 : vector<1x8x16xf32> to vector<8x16xf32>
    %31 = vector.extract_strided_slice %18 {offsets = [6, 0, 0], sizes = [1, 8, 16], strides = [1, 1, 1]} : vector<8x8x16xf32> to vector<1x8x16xf32>
    %32 = vector.shape_cast %31 : vector<1x8x16xf32> to vector<8x16xf32>
    %33 = vector.extract_strided_slice %18 {offsets = [7, 0, 0], sizes = [1, 8, 16], strides = [1, 1, 1]} : vector<8x8x16xf32> to vector<1x8x16xf32>
    %34 = vector.shape_cast %33 : vector<1x8x16xf32> to vector<8x16xf32>
    %35 = tpu.concatenate %20, %22, %24, %26, %28, %30, %32, %34 in 1 : vector<8x16xf32>, vector<8x16xf32>, vector<8x16xf32>, vector<8x16xf32>, vector<8x16xf32>, vector<8x16xf32>, vector<8x16xf32>, vector<8x16xf32> -> vector<8x128xf32>
    %c0_8 = arith.constant 0 : index
    %c0_9 = arith.constant 0 : index
    %36 = vector.load %arg3[%c0_8, %c0_9] : memref<8x128xf32, #tpu.memory_space<vmem>>, vector<8x128xf32>
    tpu.vector_store %arg3[%c0_8, %c0_9], %35 {strides = array<i32>} : memref<8x128xf32, #tpu.memory_space<vmem>>, vector<8x128xf32>,
    return
  }
  func.func @transform_0(%arg0: i32) -> (i32, i32, i32) {
    %c0_i32 = arith.constant 0 : i32
    %c0_i32_0 = arith.constant 0 : i32
    %c0_i32_1 = arith.constant 0 : i32
    return %arg0, %c0_i32, %c0_i32_0 : i32, i32, i32
  }
  func.func @transform_1(%arg0: i32) -> (i32, i32) {
    %c0_i32 = arith.constant 0 : i32
    %c0_i32_0 = arith.constant 0 : i32
    %c0_i32_1 = arith.constant 0 : i32
    return %c0_i32, %c0_i32_0 : i32, i32
  }
  func.func @transform_2(%arg0: i32) -> (i32, i32) {
    %c0_i32 = arith.constant 0 : i32
    %c0_i32_0 = arith.constant 0 : i32
    return %c0_i32, %arg0 : i32, i32
  }
}

</mosaic_0001>

<bundles_post_ra>
// kernel: tpu_custom_call.1
= control target key start
LH: loop header
LB: loop body
LE: loop exit
PB: predicated region body
PF: predicated region fallthrough
CT: control target
= control target key end

     0   :  { %7 = vsyncpa [#allocation3], 0  ;;  %s2576_s0 = inlined_call_operand.hbm [shape: f32[16,8,32], index: 0, kind: input, shape index: {}]   ;;  %s2577_s1 = inlined_call_operand.hbm [shape: f32[32,48], index: 1, kind: input, shape index: {}]   ;;  %s2578_s2 = inlined_call_operand.hbm [shape: f32[8,256], index: 2, kind: output, shape index: {}]  }
   0x1   :  { %9 = vsyncpa [#allocation3 + $0x1], 0 }
   0x2   :  { %10 = vsyncpa [#allocation6], 0 }
   0x3   :  { %11 = vsyncpa [#allocation4], 0 }
   0x4   :  { %13 = vsyncpa [#allocation4 + $0x1], 0  ;;  %s2214_s9 = smov 0   ;;  %s2216_s10 = smov 0  }
   0x5   :  { %s2218_s11 = smov 0   ;;  %s2220_s12 = smov 0  }
   0x6 LB: > { %s2235_s13 = sadd.s32 4294967295, %s2183_s12   ;;  %s1769_s14 = sadd.s32 4294967294, %s2183_s12   ;;  %s2183_s12 = sphi %s2220_s12, %s2600_s12   ;;  %s2179_s11 = sphi %s2218_s11, %s2599_s11   ;;  %s2175_s10 = sphi %s2216_s10, %s2598_s10   ;;  %s2171_s9 = sphi %s2214_s9, %s2597_s9  }
   0x7   : > { %p39_p0 = scmp.ne.s32.totalorder %s2175_s10, %s2171_s9  ;;  %p2579_p1 = scmp.eq.s32.totalorder %s2235_s13, 0 }
   0x8   : > { %p90_p3 = scmp.eq.s32.totalorder %s1769_s14, 1  ;;  %p1770_p5 = scmp.ge.s32.totalorder %s2183_s12, 1 }
   0x9   : > { %p2244_p4 = por %p2579_p1, %p39_p0  ;;  %p97_p7 = scmp.lt.s32.totalorder %s2183_s12, 3 }
   0xa   : > { %p2249_p6 = por %p90_p3, %p39_p0  ;;  %s2185_s18 = smov [#allocation5]  }
   0xb   : > { %s2583_s15 = scalar_select %p2244_p4, 1, 0 }
   0xc   : > { %s2584_s16 = scalar_select %p2249_p6, 1, 0 }
   0xd   : > { %p2254_p8 = pnand %p1770_p5, %p97_p7  ;;  %s109_s19 = sshll.u32 %s2185_s18, 4  ;;  %s110_s19 = int_to_ptr.vmem [resolvable:$true] %s109_s19 }
   0xe   : > { %s2268_s21 = sadd.s32 1, %s2183_s12   ;;  %s26_s22 = sadd.s32 1, %s2179_s11 }
   0xf   : > { %s2585_s17 = scalar_select %p2254_p8, 1, 0 }
  0x10   : > { %p1969_p9 = pneg %p2254_p8  ;;  %s23_s23 = ssub.s32 %s2183_s12, %s2268_s21 }
  0x11   : > { %s2072_s24 = scalar_lea.vmem %s110_s19, 512  ;;  %p2080_p5 = scmp.lt.s32.totalorder %s110_s19, %s110_s19 }
  0x12   : > { %p2263_p11 = pnand %p1969_p9, %p2579_p1  ;;  %p2073_p13 = scmp.ne.s32.totalorder %s110_s19, %s2072_s24 }
  0x13   : > { %p2081_p7 = scmp.lt.s32.totalorder %s2072_s24, %s2072_s24 }
  0x14   : > { %p2063_p12 = pneg %p2263_p11 }
  0x15   : > { %p2082_p10 = por %p2081_p7, %p2080_p5 }
  0x16   : > { %p2075_p0 = pnand %p2073_p13, %p2063_p12 }
  0x18   : > { %p2076_p3 = pneg %p2075_p0 }
  0x1a   : > { %p2083_p2 = pnand %p2082_p10, %p2076_p3 }
  0x1c   : > { %2086 = shalt.err (!%p2083_p2)
}
  0x1d   : > { %s2186_s25 = smov 128   ;;  %s2187_s26 = smov 8  }
  0x1e   : > { %1972 = dma.hbm_to_vmem [thread:$0]  (!%p2263_p11), %s2577_s1, 512, %s110_s19, [#allocation6], %s2186_s25, %s2186_s25, %s2187_s26  }
  0x1f   : > { %p24_p2 = scmp.eq.s32.totalorder %s23_s23, 0  ;;  %p33_p9 = scmp.ne.s32.totalorder %s2179_s11, %s2175_s10 }
  0x20   : > { %p34_p10 = scmp.eq.s32.totalorder %s2183_s12, 0  ;;  %p1982_p12 = scmp.lt.s32.totalorder %s2183_s12, 2 }
  0x21   : > { %s2288_s29 = scalar_select %p24_p2, %s2179_s11, %s26_s22  }
  0x22   : > { %p35_p13 = por %p34_p10, %p33_p9  ;;  %p2587_p0 = scmp.eq.s32.totalorder %s2235_s13, 1 }
  0x23   : > { %s123_s3 = sand.u32 1, %s2179_s11   ;;  %s1816_s4 = sshll.u32 %s2183_s12, 10 }
  0x24   : > { %p2292_p3 = por %p2587_p0, %p33_p9  ;;  %s1773_s5 = sshll.u32 %s123_s3, 6 }
  0x25   : > { %s2301_s8 = scalar_lea.hbm %s2576_s0, %s1816_s4  ;;  %s127_s14 = scalar_lea.vmem [#allocation2], %s1773_s5 }
  0x26   : > { %s2588_s30 = scalar_select %p2292_p3, 1, 0 }
  0x27   : > { %s134_s18 = sshll.u32 %s127_s14, 4  ;;  %p2303_p11 = pnand %p1982_p12, %p35_p13  ;;  %s2307_s18 = int_to_ptr.vmem [resolvable:$true] %s134_s18 }
  0x28   : > { %s2309_s20 = scalar_lea.sflag [#allocation3], %s123_s3  ;;  %s2087_s22 = scalar_lea.hbm %s2301_s8, 1024 }
  0x29   : > { %p2088_p5 = scmp.ne.s32.totalorder %s2301_s8, %s2087_s22  ;;  %p2089_p7 = pneg %p2303_p11 }
  0x2a   : > { %s2092_s27 = scalar_lea.hbm %s2576_s0, 2048  ;;  %p2093_p10 = scmp.lt.s32.totalorder %s2301_s8, %s2576_s0 }
  0x2b   : > { %p2090_p2 = pnand %p2089_p7, %p2088_p5  ;;  %p2094_p12 = scmp.lt.s32.totalorder %s2092_s27, %s2087_s22 }
  0x2d   : > { %p2091_p9 = pneg %p2090_p2  ;;  %p2095_p13 = por %p2094_p12, %p2093_p10 }
  0x2f   : > { %p2096_p0 = pnand %p2095_p13, %p2091_p9 }
  0x31   : > { %2099 = shalt.err (!%p2096_p0)
}
  0x32   : > { %s2100_s3 = scalar_lea.vmem %s2307_s18, 1024  ;;  %s2188_s5 = smov [#allocation2]  }
  0x33   : > { %p2101_p1 = scmp.ne.s32.totalorder %s2307_s18, %s2100_s3  ;;  %s2105_s6 = sshll.u32 %s2188_s5, 4  ;;  %s2106_s6 = int_to_ptr.vmem [resolvable:$false] %s2105_s6 }
  0x34   : > { %s2107_s7 = scalar_lea.vmem %s2106_s6, 2048  ;;  %p2108_p2 = scmp.lt.s32.totalorder %s2307_s18, %s2106_s6 }
  0x35   : > { %p2103_p6 = pnand %p2101_p1, %p2089_p7  ;;  %p2109_p3 = scmp.lt.s32.totalorder %s2107_s7, %s2100_s3 }
  0x37   : > { %p2104_p5 = pneg %p2103_p6  ;;  %p2110_p4 = por %p2109_p3, %p2108_p2 }
  0x39   : > { %p2111_p8 = pnand %p2110_p4, %p2104_p5 }
  0x3b   : > { %2114 = shalt.err (!%p2111_p8)
}
  0x3c   : > { %1976 = dma.hbm_to_vmem [thread:$0]  (!%p2303_p11), %s2301_s8, 1024, %s2307_s18, %s2309_s20, %s2186_s25, %s2186_s25, %s2187_s26  }
  0x3d   : > { %p2590_p1 = scmp.ne.s32.totalorder %s2585_s17, 0 }
  0x3e   : > { %s2336_s14 = sand.u32 (!%p2590_p1), 1, %s2175_s10   ;;  %p2591_p4 = scmp.ne.s32.totalorder (!%p2590_p1), %s2583_s15, 0 }
  0x3f   : > { %146 = sbr.rel (%p2590_p1) target bundleno = 1287 (0x507), region = 28  ;;  %s1777_s22 = sshll.u32 (!%p2590_p1), %s2336_s14, 6 }
  0x40   : > { %s149_s23 = scalar_lea.sflag (!%p2590_p1), [#allocation3], %s2336_s14  ;;  %s2340_s24 = scalar_lea.vmem (!%p2590_p1), [#allocation2], %s1777_s22 }
  0x44   : > { %2158 = dma.done.wait (%p2591_p4), %s149_s23, 1024  }
  0x45   : > { %2160 = vsyncadd (%p2591_p4), %s149_s23, 4294966272  ;;  %p2592_p6 = scmp.eq.s32.totalorder %s2235_s13, 0 }
  0x47   : > { %2162 = dma.done.wait (%p2592_p6), [#allocation6], 512   ;;  %p2593_p8 = pmov %p2592_p6 }
  0x48   : > { %vm190_vm0 = vcmask 261120   ;;  %v189_v0 = vld [vmem:[#allocation5 + $0x18] sm:$0xff]  ;;  %v188_v1 = vld [vmem:[#allocation5 + $0x10] sm:$0xff]  ;;  %v178_v2 = vld [vmem:[%s2340_s24] sm:$0xff]  ;;  %v2189_v12 = vmov 0.0   ;;  %vm2190_vm1 = vmmov 0  }
  0x49   : > { %2164 = vsyncadd (%p2593_p8), [#allocation6], 4294966784  ;;  %1861 = vmatprep.subr.mxu0 %v189_v0  ;;  %v187_v3 = vld [vmem:[#allocation5 + $0x8] sm:$0xff]  ;;  %1869 = vmatprep.mubr.msk.f32.mxu0 %vm190_vm0, %v178_v2  ;;  %v186_v4 = vld [vmem:[#allocation5] sm:$0xff]  ;;  %s2191_s15 = smov 112   ;;  %vm323_vm2 = vcmask 130048  }
  0x4a   : > { %1862 = vmatpush3.msra.mxu0 %v189_v0  ;;  %v179_v5 = vld [vmem:[%s2340_s24 + $0x8] sm:$0xff]  ;;  %v180_v6 = vld [vmem:[%s2340_s24 + $0x10] sm:$0xff]  ;;  %v181_v7 = vld [vmem:[%s2340_s24 + $0x18] sm:$0xff]  ;;  %1881 = vmatprep.subr.mxu1 %v2189_v12  ;;  %vm937_vm3 = vcmask 64512   ;;  %s2192_s17 = smov 96   ;;  %s2193_s25 = smov 16  }
  0x4b   : > { %1863 = vmatprep.subr.mxu0 %v188_v1  ;;  %v182_v8 = vld [vmem:[%s2340_s24 + $0x20] sm:$0xff]  ;;  %v183_v9 = vld [vmem:[%s2340_s24 + $0x28] sm:$0xff]  ;;  %v184_v10 = vld [vmem:[%s2340_s24 + $0x30] sm:$0xff]  ;;  %1883 = vmatprep.mubr.msk.f32.mxu1 %vm2190_vm1, %v2189_v12  ;;  %s2194_s26 = smov 32   ;;  %s2195_s8 = smov 48   ;;  %vm1664_vm4 = vcmask 392192  }
  0x4c   : > { %1864 = vmatpush3.msra.mxu0 %v188_v1  ;;  %v185_v11 = vld [vmem:[%s2340_s24 + $0x38] sm:$0xff]  ;;  %s2196_s18 = smov 80   ;;  %s2197_s19 = smov 64   ;;  %vm1666_vm5 = vcmask 523264   ;;  %vm1668_vm6 = vcmask 654336   ;;  %vm1670_vm7 = vcmask 785408  }
  0x4d   : > { %1865 = vmatprep.subr.mxu0 %v187_v3  ;;  %s1779_s20 = sshll.u32 %s2336_s14, 3  ;;  %s1813_s27 = sshll.u32 %s2235_s13, 7  ;;  %vm1672_vm8 = vcmask 916480  }
  0x4e   : > { %1866 = vmatpush3.msra.mxu0 %v187_v3  ;;  %s176_s28 = scalar_lea.vmem [#allocation7], %s1779_s20  ;;  %s2539_s6 = scalar_lea.hbm %s2578_s2, %s1813_s27 }
  0x4f   : > { %1867 = vmatprep.subr.mxu0 %v186_v4  ;;  %s1689_s4 = sshll.u32 %s176_s28, 4  ;;  %s1676_s7 = scalar_lea.sflag [#allocation4], %s2336_s14  ;;  %s1690_s4 = int_to_ptr.vmem [resolvable:$true] %s1689_s4 }
  0x50   : > { %1868 = vmatpush3.msra.mxu0 %v186_v4  ;;  %s2115_s22 = scalar_lea.vmem %s1690_s4, 128  ;;  %p2594_p11 = scmp.ne.s32.totalorder %s2588_s30, 0 }
  0x51   : > { %1870 = vmatmul.mubr.msk.f32.vlgmr.msra.gmra.mxu0 %vm190_vm0, %v179_v5  ;;  %1906 = vmatprep.subr.mxu0 %v2189_v12  ;;  %p2116_p3 = scmp.ne.s32.totalorder %s1690_s4, %s2115_s22  ;;  %s2198_s13 = smov [#allocation7]  }
  0x52   : > { %1872 = vmatprep.mubr.msk.f32.mxu0 %vm190_vm0, %v180_v6  ;;  %s2119_s23 = sshll.u32 %s2198_s13, 4  ;;  %s2120_s23 = int_to_ptr.vmem [resolvable:$false] %s2119_s23 }
  0x53   : > { %p2117_p7 = pnand %p2116_p3, %p2594_p11  ;;  %s2121_s24 = scalar_lea.vmem %s2120_s23, 256 }
  0x54   : > { %p2122_p10 = scmp.lt.s32.totalorder %s1690_s4, %s2120_s23  ;;  %p2123_p12 = scmp.lt.s32.totalorder %s2121_s24, %s2115_s22 }
  0x55   : > { %1873 = vmatmul.mubr.msk.f32.gmra.mxu0 %vm190_vm0, %v181_v7  ;;  %p2118_p9 = pneg %p2117_p7 }
  0x56   : > { %1875 = vmatprep.mubr.msk.f32.mxu0 %vm190_vm0, %v182_v8  ;;  %p2124_p13 = por %p2123_p12, %p2122_p10 }
  0x58   : > { %p2125_p0 = pnand %p2124_p13, %p2118_p9 }
  0x59   : > { %1876 = vmatmul.mubr.msk.f32.gmra.mxu0 %vm190_vm0, %v183_v9 }
  0x5a   : > { %1878 = vmatprep.mubr.msk.f32.mxu0 %vm190_vm0, %v184_v10 }
  0x5d   : > { %1879 = vmatmul.mubr.msk.f32.gmra.mxu0 %vm190_vm0, %v185_v11 }
  0x5e   : > { %1908 = vmatprep.mubr.msk.f32.mxu0 %vm2190_vm1, %v2189_v12 }
 0x111   : > { %v2372_v13 = vpop.f32.mrf.mxu0 }
 0x113   : > { %v2374_v14 = vpop.f32.mrf.mxu0 }
 0x114   : > { %321 = vrot.lane.b32.xlu0 %v2374_v14, %s2191_s15 }
 0x115   : > { %v2378_v15 = vpop.f32.mrf.mxu0 }
 0x117   : > { %v2380_v16 = vpop.f32.mrf.mxu0 }
 0x118   : > { %399 = vrot.lane.b32.xlu0 %v2372_v13, %s2191_s15  ;;  %476 = vrot.lane.b32.xlu1 %v2380_v16, %s2191_s15 }
 0x119   : > { %v2386_v17 = vpop.f32.mrf.mxu0 }
 0x11b   : > { %v2388_v18 = vpop.f32.mrf.mxu0 }
 0x11c   : > { %553 = vrot.lane.b32.xlu1 %v2378_v15, %s2191_s15  ;;  %630 = vrot.lane.b32.xlu0 %v2388_v18, %s2191_s15 }
 0x11d   : > { %v2394_v19 = vpop.f32.mrf.mxu0 }
 0x11f   : > { %v2396_v20 = vpop.f32.mrf.mxu0 }
 0x120   : > { %707 = vrot.lane.b32.xlu1 %v2386_v17, %s2191_s15  ;;  %784 = vrot.lane.b32.xlu0 %v2396_v20, %s2191_s15 }
 0x124   : > { %861 = vrot.lane.b32.xlu1 %v2394_v19, %s2191_s15 }
 0x186   : > { %v322_v21 = vpop.permute.xlu0 %321 }
 0x187   : > { %1882 = vmatpush3.xpose.msk.msra.mxu1 %vm323_vm2, %v322_v21 }
 0x188   : > { %1886 = vmatprep.subr.mxu1 %v2189_v12 }
 0x18a   : > { %1884 = vmatmul.mubr.msk.f32.vlgmr.msra.gmra.mxu1 %vm323_vm2, %v2374_v14  ;;  %v400_v22 = vpop.permute.xlu0 %399  ;;  %v477_v23 = vpop.permute.xlu1 %476 }
 0x18b   : > { %1887 = vmatpush3.xpose.msk.msra.mxu1 %vm323_vm2, %v400_v22  ;;  %1888 = vmatprep.mubr.msk.f32.mxu1 %vm2190_vm1, %v2189_v12 }
 0x18c   : > { %1891 = vmatprep.subr.mxu1 %v2189_v12 }
 0x18e   : > { %1889 = vmatmul.mubr.msk.f32.vlgmr.msra.gmra.mxu1 %vm323_vm2, %v2372_v13  ;;  %v554_v24 = vpop.permute.xlu1 %553  ;;  %v631_v26 = vpop.permute.xlu0 %630 }
 0x18f   : > { %1892 = vmatpush3.xpose.msk.msra.mxu1 %vm323_vm2, %v477_v23  ;;  %1893 = vmatprep.mubr.msk.f32.mxu1 %vm2190_vm1, %v2189_v12 }
 0x190   : > { %1896 = vmatprep.subr.mxu1 %v2189_v12 }
 0x192   : > { %1894 = vmatmul.mubr.msk.f32.vlgmr.msra.gmra.mxu1 %vm323_vm2, %v2380_v16  ;;  %v708_v25 = vpop.permute.xlu1 %707  ;;  %v785_v28 = vpop.permute.xlu0 %784 }
 0x193   : > { %1897 = vmatpush3.xpose.msk.msra.mxu1 %vm323_vm2, %v554_v24  ;;  %1907 = vmatpush3.xpose.msk.msra.mxu0 %vm323_vm2, %v708_v25 }
 0x194   : > { %1898 = vmatprep.mubr.msk.f32.mxu1 %vm2190_vm1, %v2189_v12  ;;  %1901 = vmatprep.subr.mxu1 %v2189_v12 }
 0x195   : > { %1916 = vmatprep.subr.mxu0 %v2189_v12 }
 0x196   : > { %1899 = vmatmul.mubr.msk.f32.vlgmr.msra.gmra.mxu1 %vm323_vm2, %v2378_v15  ;;  %1909 = vmatmul.mubr.msk.f32.vlgmr.msra.gmra.mxu0 %vm323_vm2, %v2386_v17  ;;  %v862_v27 = vpop.permute.xlu1 %861 }
 0x197   : > { %1902 = vmatpush3.xpose.msk.msra.mxu1 %vm323_vm2, %v631_v26  ;;  %1917 = vmatpush3.xpose.msk.msra.mxu0 %vm323_vm2, %v862_v27 }
 0x198   : > { %1903 = vmatprep.mubr.msk.f32.mxu1 %vm2190_vm1, %v2189_v12  ;;  %1918 = vmatprep.mubr.msk.f32.mxu0 %vm2190_vm1, %v2189_v12 }
 0x199   : > { %1911 = vmatprep.subr.mxu1 %v2189_v12  ;;  %1926 = vmatprep.subr.mxu0 %v2189_v12 }
 0x19a   : > { %1904 = vmatmul.mubr.msk.f32.vlgmr.msra.gmra.mxu1 %vm323_vm2, %v2388_v18  ;;  %1919 = vmatmul.mubr.msk.f32.vlgmr.msra.gmra.mxu0 %vm323_vm2, %v2394_v19 }
 0x19b   : > { %1912 = vmatpush3.xpose.msk.msra.mxu1 %vm323_vm2, %v785_v28  ;;  %1913 = vmatprep.mubr.msk.f32.mxu1 %vm2190_vm1, %v2189_v12 }
 0x19c   : > { %1921 = vmatprep.subr.mxu1 %v2189_v12  ;;  %1928 = vmatprep.mubr.msk.f32.mxu0 %vm2190_vm1, %v2189_v12 }
 0x19e   : > { %1914 = vmatmul.mubr.msk.f32.vlgmr.msra.gmra.mxu1 %vm323_vm2, %v2396_v20 }
 0x19f   : > { %1923 = vmatprep.mubr.msk.f32.mxu1 %vm2190_vm1, %v2189_v12 }
 0x24a   : > { %v394_v29 = vpop.f32.mrf.mxu1 }
 0x24b   : > { %v938_v30 = vsel %vm937_vm3, %v394_v29, -inf }
 0x24c   : > { %v1885_v31 = vpop.f32.mrf.mxu1  ;;  %939 = vmax.xlane.f32.xlu0 %v938_v30 }
 0x24e   : > { %v471_v32 = vpop.f32.mrf.mxu1 }
 0x24f   : > { %v941_v33 = vsel %vm937_vm3, %v471_v32, -inf }
 0x250   : > { %v1890_v34 = vpop.f32.mrf.mxu1  ;;  %942 = vmax.xlane.f32.xlu1 %v941_v33 }
 0x252   : > { %v548_v35 = vpop.f32.mrf.mxu1 }
 0x253   : > { %v944_v36 = vsel %vm937_vm3, %v548_v35, -inf }
 0x254   : > { %v1895_v37 = vpop.f32.mrf.mxu1  ;;  %945 = vmax.xlane.f32.xlu0 %v944_v36 }
 0x256   : > { %v625_v38 = vpop.f32.mrf.mxu1  ;;  %v779_v39 = vpop.f32.mrf.mxu0 }
 0x257   : > { %v947_v40 = vsel %vm937_vm3, %v625_v38, -inf  ;;  %v953_v45 = vsel %vm937_vm3, %v779_v39, -inf }
 0x258   : > { %v1900_v41 = vpop.f32.mrf.mxu1  ;;  %948 = vmax.xlane.f32.xlu0 %v947_v40  ;;  %v1910_v42 = vpop.f32.mrf.mxu0 }
 0x25a   : > { %v2456_v43 = vpop.f32.mrf.mxu1  ;;  %v933_v44 = vpop.f32.mrf.mxu0 }
 0x25b   : > { %v959_v49 = vsel %vm937_vm3, %v933_v44, -inf  ;;  %v950_v51 = vsel %vm937_vm3, %v2456_v43, -inf }
 0x25c   : > { %v1905_v46 = vpop.f32.mrf.mxu1  ;;  %954 = vmax.xlane.f32.xlu0 %v953_v45  ;;  %v1920_v47 = vpop.f32.mrf.mxu0 }
 0x25e   : > { %v2459_v48 = vpop.f32.mrf.mxu1 }
 0x25f   : > { %v956_v52 = vsel %vm937_vm3, %v2459_v48, -inf }
 0x260   : > { %v1915_v50 = vpop.f32.mrf.mxu1  ;;  %960 = vmax.xlane.f32.xlu0 %v959_v49 }
 0x261   : > { %1026 = vrot.lane.b32.xlu1 %v2374_v14, %s2192_s17 }
 0x265   : > { %1178 = vrot.lane.b32.xlu1 %v2380_v16, %s2192_s17 }
 0x276   : > { %1102 = vrot.lane.b32.xlu0 %v2372_v13, %s2192_s17 }
 0x289   : > { %951 = vmax.xlane.f32.xlu1 %v950_v51 }
 0x28d   : > { %957 = vmax.xlane.f32.xlu1 %v956_v52 }
 0x29e   : > { %1254 = vrot.lane.b32.xlu1 %v2378_v15, %s2192_s17 }
 0x2d5   : > { %v940_v53 = vpop.xlane.xlu0 %939 }
 0x2d6   : > { %v962_v54 = vsub.f32 %v394_v29, %v940_v53 }
 0x2d8   : > { %v970_v55 = vmul.f32 1.442695, %v962_v54 }
 0x2d9   : > { %v943_v56 = vpop.xlane.xlu1 %942 }
 0x2da   : > { %2029 = vpow2.f32 %v970_v55  ;;  %v963_v57 = vsub.f32 %v471_v32, %v943_v56 }
 0x2dc   : > { %v972_v58 = vmul.f32 1.442695, %v963_v57 }
 0x2dd   : > { %v1027_v59 = vpop.permute.xlu1 %1026  ;;  %v946_v60 = vpop.xlane.xlu0 %945 }
 0x2de   : > { %2031 = vpow2.f32 %v972_v58  ;;  %v964_v61 = vsub.f32 %v548_v35, %v946_v60  ;;  %1922 = vmatpush3.msra.mxu1 %v1027_v59 }
 0x2df   : > { %1931 = vmatprep.subr.mxu1 %v2189_v12 }
 0x2e0   : > { %v974_v62 = vmul.f32 1.442695, %v964_v61 }
 0x2e1   : > { %v949_v63 = vpop.xlane.xlu0 %948  ;;  %v1179_v26 = vpop.permute.xlu1 %1178 }
 0x2e2   : > { %2033 = vpow2.f32 %v974_v62  ;;  %v965_v3 = vsub.f32 %v625_v38, %v949_v63 }
 0x2e4   : > { %v976_v9 = vmul.f32 1.442695, %v965_v3 }
 0x2e5   : > { %v955_v0 = vpop.xlane.xlu0 %954 }
 0x2e6   : > { %v967_v1 = vsub.f32 %v779_v39, %v955_v0 }
 0x2e7   : > { %v2030_v2 = vpop.eup %2029 }
 0x2e8   : > { %v980_v4 = vmul.f32 1.442695, %v967_v1  ;;  %v986_v5 = vsel %vm937_vm3, %v2030_v2, 0.0 }
 0x2e9   : > { %987 = vadd.xlane.f32.xlu1 %v986_v5  ;;  %v961_v6 = vpop.xlane.xlu0 %960 }
 0x2ea   : > { %2035 = vpow2.f32 %v980_v4  ;;  %v969_v7 = vsub.f32 %v933_v44, %v961_v6 }
 0x2eb   : > { %v2032_v8 = vpop.eup %2031 }
 0x2ec   : > { %v984_v10 = vmul.f32 1.442695, %v969_v7  ;;  %v989_v11 = vsel %vm937_vm3, %v2032_v8, 0.0 }
 0x2ed   : > { %990 = vadd.xlane.f32.xlu0 %v989_v11  ;;  %v1103_v13 = vpop.permute.xlu0 %1102 }
 0x2ee   : > { %2037 = vpow2.f32 %v984_v10  ;;  %1927 = vmatpush3.msra.mxu0 %v1103_v13 }
 0x2ef   : > { %v2034_v14 = vpop.eup %2033  ;;  %1936 = vmatprep.subr.mxu0 %v2189_v12  ;;  %2039 = vpow2.f32 %v976_v9 }
 0x2f0   : > { %v992_v15 = vsel %vm937_vm3, %v2034_v14, 0.0 }
 0x2f1   : > { %993 = vadd.xlane.f32.xlu1 %v992_v15 }
 0x2f7   : > { %v2479_v16 = vpop.eup %2035 }
 0x2f8   : > { %v1001_v21 = vsel %vm937_vm3, %v2479_v16, 0.0 }
 0x2f9   : > { %1002 = vadd.xlane.f32.xlu0 %v1001_v21 }
 0x2fb   : > { %v2483_v22 = vpop.eup %2037 }
 0x2fc   : > { %v1007_v23 = vsel %vm937_vm3, %v2483_v22, 0.0  ;;  %v2040_v24 = vpop.eup %2039 }
 0x2fd   : > { %1008 = vadd.xlane.f32.xlu0 %v1007_v23  ;;  %v995_v25 = vsel %vm937_vm3, %v2040_v24, 0.0 }
 0x301   : > { %996 = vadd.xlane.f32.xlu0 %v995_v25 }
 0x302   : > { %1406 = vrot.lane.b32.xlu1 %v2386_v17, %s2192_s17 }
 0x312   : > { %v952_v27 = vpop.xlane.xlu1 %951 }
 0x313   : > { %v966_v28 = vsub.f32 %v2456_v43, %v952_v27 }
 0x315   : > { %v978_v29 = vmul.f32 1.442695, %v966_v28 }
 0x316   : > { %v958_v30 = vpop.xlane.xlu1 %957 }
 0x317   : > { %2041 = vpow2.f32 %v978_v29  ;;  %v968_v31 = vsub.f32 %v2459_v48, %v958_v30  ;;  %1330 = vrot.lane.b32.xlu0 %v2388_v18, %s2192_s17 }
 0x319   : > { %v982_v32 = vmul.f32 1.442695, %v968_v31 }
 0x31a   : > { %v1255_v36 = vpop.permute.xlu1 %1254 }
 0x31b   : > { %2043 = vpow2.f32 %v982_v32  ;;  %1482 = vrot.lane.b32.xlu0 %v2396_v20, %s2192_s17 }
 0x324   : > { %v2042_v33 = vpop.eup %2041 }
 0x325   : > { %v998_v17 = vsel %vm937_vm3, %v2042_v33, 0.0 }
 0x326   : > { %999 = vadd.xlane.f32.xlu1 %v998_v17 }
 0x328   : > { %v2497_v34 = vpop.eup %2043 }
 0x329   : > { %v1004_v35 = vsel %vm937_vm3, %v2497_v34, 0.0 }
 0x32a   : > { %1005 = vadd.xlane.f32.xlu1 %v1004_v35 }
 0x33b   : > { %1558 = vrot.lane.b32.xlu1 %v2394_v19, %s2192_s17 }
 0x372   : > { %v988_v18 = vpop.xlane.xlu1 %987 }
 0x373   : > { %2045 = vrcp.f32 %v988_v18 }
 0x376   : > { %v991_v37 = vpop.xlane.xlu0 %990 }
 0x377   : > { %2047 = vrcp.f32 %v991_v37 }
 0x37a   : > { %v994_v38 = vpop.xlane.xlu1 %993 }
 0x37b   : > { %2049 = vrcp.f32 %v994_v38 }
 0x37e   : > { %v1407_v50 = vpop.permute.xlu1 %1406 }
 0x380   : > { %v2046_v20 = vpop.eup %2045 }
 0x381   : > { %v1011_v39 = vmul.f32 %v2046_v20, %v2030_v2 }
 0x382   : > { %v1003_v40 = vpop.xlane.xlu0 %1002 }
 0x383   : > { %1924 = vmatmul.mubr.msk.f32.vlgmr.msra.gmra.mxu1 %vm937_vm3, %v1011_v39 }
 0x384   : > { %v2048_v41 = vpop.eup %2047  ;;  %1932 = vmatpush3.msra.mxu1 %v1179_v26  ;;  %1933 = vmatprep.mubr.msk.f32.mxu1 %vm2190_vm1, %v2189_v12 }
 0x385   : > { %v1013_v42 = vmul.f32 %v2048_v41, %v2032_v8  ;;  %1941 = vmatprep.subr.mxu1 %v2189_v12 }
 0x386   : > { %v1009_v19 = vpop.xlane.xlu0 %1008 }
 0x387   : > { %1929 = vmatmul.mubr.msk.f32.vlgmr.msra.gmra.mxu0 %vm937_vm3, %v1013_v42 }
 0x388   : > { %v2050_v43 = vpop.eup %2049  ;;  %1937 = vmatpush3.msra.mxu0 %v1255_v36  ;;  %1938 = vmatprep.mubr.msk.f32.mxu0 %vm2190_vm1, %v2189_v12 }
 0x389   : > { %v1015_v44 = vmul.f32 %v2050_v43, %v2034_v14  ;;  %1946 = vmatprep.subr.mxu0 %v2189_v12 }
 0x38a   : > { %v997_v45 = vpop.xlane.xlu0 %996 }
 0x38b   : > { %2051 = vrcp.f32 %v997_v45  ;;  %1934 = vmatmul.mubr.msk.f32.vlgmr.msra.gmra.mxu1 %vm937_vm3, %v1015_v44 }
 0x38c   : > { %1943 = vmatprep.mubr.msk.f32.mxu1 %vm2190_vm1, %v2189_v12  ;;  %2053 = vrcp.f32 %v1003_v40 }
 0x38d   : > { %2055 = vrcp.f32 %v1009_v19 }
 0x38e   : > { %v1331_v46 = vpop.permute.xlu0 %1330 }
 0x38f   : > { %1942 = vmatpush3.msra.mxu1 %v1331_v46 }
 0x390   : > { %1951 = vmatprep.subr.mxu1 %v2189_v12 }
 0x392   : > { %v1483_v59 = vpop.permute.xlu0 %1482 }
 0x398   : > { %v2052_v47 = vpop.eup %2051 }
 0x399   : > { %v1017_v48 = vmul.f32 %v2052_v47, %v2040_v24  ;;  %v2054_v49 = vpop.eup %2053 }
 0x39a   : > { %v1021_v51 = vmul.f32 %v2054_v49, %v2479_v16  ;;  %v2056_v54 = vpop.eup %2055 }
 0x39b   : > { %1939 = vmatmul.mubr.msk.f32.vlgmr.msra.gmra.mxu0 %vm937_vm3, %v1017_v48  ;;  %v1025_v56 = vmul.f32 %v2056_v54, %v2483_v22 }
 0x39c   : > { %1947 = vmatpush3.msra.mxu0 %v1407_v50  ;;  %1948 = vmatprep.mubr.msk.f32.mxu0 %vm2190_vm1, %v2189_v12 }
 0x39d   : > { %1956 = vmatprep.subr.mxu0 %v2189_v12 }
 0x39f   : > { %1949 = vmatmul.mubr.msk.f32.vlgmr.msra.gmra.mxu0 %vm937_vm3, %v1021_v51 }
 0x3a0   : > { %1958 = vmatprep.mubr.msk.f32.mxu0 %vm2190_vm1, %v2189_v12 }
 0x3af   : > { %v1000_v52 = vpop.xlane.xlu1 %999 }
 0x3b0   : > { %2057 = vrcp.f32 %v1000_v52 }
 0x3b3   : > { %v1006_v53 = vpop.xlane.xlu1 %1005 }
 0x3b4   : > { %2059 = vrcp.f32 %v1006_v53 }
 0x3b7   : > { %v1559_v55 = vpop.permute.xlu1 %1558 }
 0x3b8   : > { %1957 = vmatpush3.msra.mxu0 %v1559_v55 }
 0x3b9   : > { %1959 = vmatmul.mubr.msk.f32.vlgmr.msra.gmra.mxu0 %vm937_vm3, %v1025_v56 }
 0x3bd   : > { %v2058_v57 = vpop.eup %2057 }
 0x3be   : > { %v1019_v58 = vmul.f32 %v2058_v57, %v2042_v33 }
 0x3c0   : > { %1944 = vmatmul.mubr.msk.f32.vlgmr.msra.gmra.mxu1 %vm937_vm3, %v1019_v58 }
 0x3c1   : > { %v2060_v60 = vpop.eup %2059  ;;  %1952 = vmatpush3.msra.mxu1 %v1483_v59  ;;  %1953 = vmatprep.mubr.msk.f32.mxu1 %vm2190_vm1, %v2189_v12 }
 0x3c2   : > { %v1023_v61 = vmul.f32 %v2060_v60, %v2497_v34 }
 0x3c4   : > { %1954 = vmatmul.mubr.msk.f32.vlgmr.msra.gmra.mxu1 %vm937_vm3, %v1023_v61 }
 0x443   : > { %v1098_v62 = vpop.f32.mrf.mxu1 }
 0x445   : > { %v1925_v63 = vpop.f32.mrf.mxu1 }
 0x447   : > { %v1174_v0 = vpop.f32.mrf.mxu0 }
 0x448   : > { %1635 = vrot.lane.b32.xlu0 %v1174_v0, %s2193_s25 }
 0x449   : > { %v1930_v1 = vpop.f32.mrf.mxu0 }
 0x44b   : > { %v1250_v2 = vpop.f32.mrf.mxu1 }
 0x44c   : > { %1639 = vrot.lane.b32.xlu1 %v1250_v2, %s2194_s26 }
 0x44d   : > { %v1935_v3 = vpop.f32.mrf.mxu1 }
 0x45b   : > { %v1326_v4 = vpop.f32.mrf.mxu0 }
 0x45c   : > { %1643 = vrot.lane.b32.xlu0 %v1326_v4, %s2195_s8 }
 0x45d   : > { %v1940_v5 = vpop.f32.mrf.mxu0 }
 0x45f   : > { %v1478_v6 = vpop.f32.mrf.mxu0 }
 0x460   : > { %1651 = vrot.lane.b32.xlu0 %v1478_v6, %s2196_s18 }
 0x461   : > { %v1950_v12 = vpop.f32.mrf.mxu0 }
 0x479   : > { %v1630_v7 = vpop.f32.mrf.mxu0 }
 0x47a   : > { %1659 = vrot.lane.b32.xlu0 %v1630_v7, %s2191_s15 }
 0x47b   : > { %v1960_v8 = vpop.f32.mrf.mxu0 }
 0x480   : > { %v1402_v9 = vpop.f32.mrf.mxu1 }
 0x481   : > { %1647 = vrot.lane.b32.xlu1 %v1402_v9, %s2197_s19 }
 0x482   : > { %v1945_v10 = vpop.f32.mrf.mxu1 }
 0x484   : > { %v1554_v11 = vpop.f32.mrf.mxu1 }
 0x485   : > { %1655 = vrot.lane.b32.xlu1 %v1554_v11, %s2192_s17 }
 0x486   : > { %v1955_v13 = vpop.f32.mrf.mxu1 }
 0x4ba   : > { %v1636_v14 = vpop.permute.xlu0 %1635 }
 0x4bb   : > { %v1662_v21 = vsel %vm323_vm2, %v1098_v62, %v1636_v14 }
 0x4be   : > { %v1640_v16 = vpop.permute.xlu1 %1639 }
 0x4bf   : > { %v1663_v22 = vsel %vm190_vm0, %v1662_v21, %v1640_v16 }
 0x4ce   : > { %v1644_v15 = vpop.permute.xlu0 %1643 }
 0x4cf   : > { %v1665_v23 = vsel %vm1664_vm4, %v1663_v22, %v1644_v15 }
 0x4d2   : > { %v1652_v25 = vpop.permute.xlu0 %1651 }
 0x4ec   : > { %v1660_v29 = vpop.permute.xlu0 %1659 }
 0x4f3   : > { %v1648_v24 = vpop.permute.xlu1 %1647 }
 0x4f4   : > { %v1667_v26 = vsel %vm1666_vm5, %v1665_v23, %v1648_v24 }
 0x4f5   : > { %v1669_v28 = vsel %vm1668_vm6, %v1667_v26, %v1652_v25 }
 0x4f7   : > { %v1656_v27 = vpop.permute.xlu1 %1655 }
 0x4f8   : > { %v1671_v30 = vsel %vm1670_vm7, %v1669_v28, %v1656_v27 }
 0x4f9   : > { %v1673_v31 = vsel %vm1672_vm8, %v1671_v30, %v1660_v29 }
 0x4fa   : > { %1674 = vst [vmem:[%s176_s28] sm:$0xff] %v1673_v31 }
 0x4fb   : > { %2128 = shalt.err (!%p2125_p0)
}
 0x4fc   : > { %s2129_s15 = scalar_lea.hbm %s2539_s6, 128  ;;  %s2133_s25 = scalar_lea.hbm %s2578_s2, 256 }
 0x4fd   : > { %p2130_p5 = scmp.ne.s32.totalorder %s2539_s6, %s2129_s15  ;;  %p2134_p4 = scmp.lt.s32.totalorder %s2539_s6, %s2578_s2 }
 0x4fe   : > { %p2135_p6 = scmp.lt.s32.totalorder %s2133_s25, %s2129_s15 }
 0x4ff   : > { %p2131_p2 = pnand %p2130_p5, %p2594_p11 }
 0x500   : > { %p2136_p8 = por %p2135_p6, %p2134_p4 }
 0x501   : > { %p2132_p1 = pneg %p2131_p2 }
 0x503   : > { %p2137_p3 = pnand %p2136_p8, %p2132_p1 }
 0x505   : > { %2140 = shalt.err (!%p2137_p3)
}
 0x506   : > { %1967 = dma.vmem_to_hbm [thread:$0]  (%p2594_p11), %s1690_s4, 128, %s2539_s6, %s1676_s7  }
 0x507 PF: > { %s1701_s18 = sand.u32 1, %s2171_s9   ;;  %p2595_p7 = scmp.ne.s32.totalorder %s2584_s16, 0 }
 0x508   : > { %p2596_p9 = scmp.ge.s32.totalorder %s2183_s12, 2  ;;  %s1702_s19 = scalar_lea.sflag [#allocation4], %s1701_s18 }
 0x50a   : > { %p1978_p10 = pnand %p2596_p9, %p2595_p7 }
 0x50c   : > { %p1979_p12 = pneg %p1978_p10 }
 0x50e   : > { %2166 = dma.done.wait (%p1979_p12), %s1702_s19, 128  }
 0x50f   : > { %2168 = vsyncadd (%p1979_p12), %s1702_s19, 4294967168  ;;  %p16_p13 = scmp.ge.s32.totalorder %s2268_s21, 4   ;;  %s2597_s9 = smov %s2175_s10 }
 0x510   : > { %s2598_s10 = smov %s2179_s11  ;;  %s2599_s11 = smov %s2288_s29 }
 0x511   : > { %s2600_s12 = smov %s2268_s21  ;;  %18 = sbr.rel (!%p16_p13) target bundleno = 6 (0x6), region = 77 }
 0x516   :  { %1707 = vsyncpa [#allocation3], 1 }
 0x517   :  { %1709 = vsyncpa [#allocation3 + $0x1], 1 }
 0x518   :  { %1710 = vsyncpa [#allocation6], 1 }
 0x519   :  { %1711 = vsyncpa [#allocation4], 1 }
 0x51a   :  { %1713 = vsyncpa [#allocation4 + $0x1], 1 }

</bundles_post_ra>
